<compile_context>
chip_gen: v5e
topology: v5e:2x2
jax: 0.10.0
libtpu: 0.0.40
codegen_flags: <defaults>
</compile_context>

<pallas_src>
import functools

import jax
import jax.numpy as jnp
from jax.experimental import pallas as pl
from jax.experimental.pallas import tpu as pltpu

EPS = 1e-8          # matches torch F.cosine_similarity eps
_LANES = 128
_SUBLANES = 8


def _min_sublane(dtype) -> int:
    """Minimum batch-tile granularity for the given dtype's sublane packing."""
    return {4: 8, 2: 16, 1: 32}.get(jnp.dtype(dtype).itemsize, 8)


def _choose_tile_b(b: int, dtype) -> int:
    # nb == 1 for moderate batches: fills the MXU M-dim (v6e MXU is 2x256x256)
    # and avoids per-grid-step overhead.  Block dim == array dim, so any B is
    # a legal block shape.
    if b <= 512:
        return b
    min_t = _min_sublane(dtype)
    for t in (512, 256, 128, 64, 32, 16, 8):
        if t >= min_t and b % t == 0:
            return t
    return b  # odd batch: single full block


def _mnrl_kernel(anchor_ref, cands_ref, out_ref, *, scale, tile_b):
    # anchor_ref: [tile_b, D] raw anchors
    # cands_ref:  [N, D]      pre-L2-normalized candidates (VMEM-resident)
    # out_ref:    [1, 8, 128] lane-dense partial-CE slab for this tile
    i = pl.program_id(0)

    # Normalize this anchor tile; fold `scale` into the inverse norm so the
    # MXU output is already `scale * cosine` (no [tb, N] post-multiply).
    a32 = anchor_ref[...].astype(jnp.float32)                       # [tb, D]
    sq = jnp.sum(a32 * a32, axis=-1, keepdims=True)
    inv = jax.lax.rsqrt(jnp.maximum(sq, EPS * EPS)) * scale         # EUP rsqrt
    a_scaled = a32 * inv                                            # [tb, D] f32

    # scores[b, n] = scale * cos(anchor_b, cand_n): MXU contraction, f32 acc.
    scores = jax.lax.dot_general(
        a_scaled.astype(cands_ref.dtype), cands_ref[...],
        dimension_numbers=(((1,), (1,)), ((), ())),
        preferred_element_type=jnp.float32)                         # [tb, N]

    # Logits are bounded by `scale` (unit-norm operands, |cos| <= 1), so skip
    # the row-max XLU pass and shift by the constant bound instead.
    sum_exp = jnp.sum(jnp.exp(scores - scale), axis=-1, keepdims=True)
    lse = scale + jnp.log(sum_exp)                                  # [tb, 1]

    # Positive (target) logit of local row r is candidate i*tile_b + r:
    # compute it directly against those candidate rows -> O(tb*D).
    off = pl.multiple_of(i * tile_b, tile_b)
    p_pos = cands_ref[pl.ds(off, tile_b), :].astype(jnp.float32)    # [tb, D]
    pos = jnp.sum(a_scaled * p_pos, axis=-1, keepdims=True)         # [tb, 1]

    # Partial sum of per-row CE losses for this tile; broadcast into a full
    # (8, 128) lane-dense block so the store is a single unmasked vst.
    partial = jnp.sum(lse - pos)
    out_ref[...] = jnp.full((1, _SUBLANES, _LANES), partial, dtype=jnp.float32)


def mnrl_loss(anchor_emb: jax.Array, pos_negs_emb: jax.Array,
              *, scale: float = 20.0, tile_b: int | None = None,
              matmul_dtype=None) -> jax.Array:
    """anchor_emb: [B, D], pos_negs_emb: [N, D] with N >= B -> scalar f32 loss."""
    B, D = anchor_emb.shape
    N, D2 = pos_negs_emb.shape
    assert D == D2, (D, D2)
    assert N >= B, "CrossEntropy labels arange(B) need at least B candidates"

    # Hoisted candidate normalization: done ONCE here instead of once per grid
    # step inside the kernel.  Optionally stored in bf16 for MXU throughput
    # and half the resident-candidate VMEM (slight ~1e-3 rel accuracy cost).
    cand_dtype = (jnp.dtype(matmul_dtype) if matmul_dtype is not None
                  else jnp.dtype(pos_negs_emb.dtype))
    p32 = pos_negs_emb.astype(jnp.float32)
    psq = jnp.sum(p32 * p32, axis=-1, keepdims=True)
    cands = (p32 * jax.lax.rsqrt(jnp.maximum(psq, EPS * EPS))).astype(cand_dtype)

    if tile_b is None:
        tile_b = _choose_tile_b(B, cand_dtype)
    assert B % tile_b == 0, (B, tile_b)
    assert tile_b == B or tile_b % _min_sublane(cand_dtype) == 0, (
        f"tile_b={tile_b} must be a multiple of {_min_sublane(cand_dtype)} "
        f"for dtype {cand_dtype}")
    nb = B // tile_b

    kernel = functools.partial(_mnrl_kernel, scale=float(scale), tile_b=tile_b)

    # VMEM budget: double-buffered anchor tile, single-buffered resident
    # candidates, [tb, N] f32 scores + exp temp, f32 anchor copies + positive
    # slice, plus margin.  Ceiling from the actual chip's VMEM (25% headroom)
    # instead of a fixed 32 MiB cap.
    a_item = jnp.dtype(anchor_emb.dtype).itemsize
    c_item = jnp.dtype(cand_dtype).itemsize
    vmem_est = (2 * tile_b * D * a_item          # anchor tile (double-buffered)
                + N * D * c_item                 # resident candidates (1 buffer)
                + 2 * tile_b * N * 4             # scores + exp temp (f32)
                + 4 * tile_b * D * 4             # f32 anchor copies + pos slice
                + (1 << 20))                     # margin
    try:
        vmem_cap = pltpu.get_tpu_info().vmem_capacity_bytes
    except Exception:  # emulator / older runtimes
        vmem_cap = 64 * 1024 * 1024              # conservative (v7x per-TC)
    ceiling = (vmem_cap * 3) // 4
    vmem_limit = int(min(ceiling, max(8 << 20, (vmem_est * 3) // 2)))

    partials = pl.pallas_call(
        kernel,
        out_shape=jax.ShapeDtypeStruct((nb, _SUBLANES, _LANES), jnp.float32),
        grid=(nb,),
        in_specs=[
            # Anchors: tiled over the batch axis (default double-buffering).
            pl.BlockSpec((tile_b, D), lambda i: (i, 0)),
            # Candidates: constant block index -> VMEM-resident across the
            # grid; single buffer (no wasted double-buffer copy).
            pl.BlockSpec((N, D), lambda i: (0, 0),
                         pipeline_mode=pl.Buffered(1)),
        ],
        out_specs=pl.BlockSpec((1, _SUBLANES, _LANES), lambda i: (i, 0, 0)),
        compiler_params=pltpu.CompilerParams(
            dimension_semantics=("parallel",),   # megacore-shard the batch axis
            vmem_limit_bytes=vmem_limit,
        ),
    )(anchor_emb, cands)

    # Tiny cross-block reduction + mean over the B anchors (CE 'mean').
    return jnp.sum(partials[:, 0, 0]) / B


def _reference_loss(anchor_emb, pos_negs_emb, scale=20.0):
    """Pure-JAX reference, faithful to the PyTorch forward (per-vector eps)."""
    a = anchor_emb.astype(jnp.float32)
    p = pos_negs_emb.astype(jnp.float32)
    na = jnp.maximum(jnp.linalg.norm(a, axis=-1, keepdims=True), EPS)
    np_ = jnp.maximum(jnp.linalg.norm(p, axis=-1, keepdims=True), EPS)
    scores = scale * ((a / na) @ (p / np_).T)                 # [B, N]
    b = a.shape[0]
    log_probs = jax.nn.log_softmax(scores, axis=-1)
    return -jnp.mean(log_probs[jnp.arange(b), jnp.arange(b)])


if __name__ == "__main__":
    # Small demo: 16 anchors, 16 in-batch candidates (positive n == b), D = 128
    # (lane-dense hidden dim).  tile_b=8 -> grid of 2 blocks so the dynamic
    # positive-slice path and the cross-block reduction are exercised.
    B, N, D = 16, 16, 128
    key = jax.random.PRNGKey(0)
    k_a, k_p = jax.random.split(key)
    anchor = jax.random.normal(k_a, (B, D), dtype=jnp.float32)
    pos_negs = jax.random.normal(k_p, (N, D), dtype=jnp.float32)

    loss = jax.block_until_ready(mnrl_loss(anchor, pos_negs, tile_b=8))
    ref = jax.block_until_ready(_reference_loss(anchor, pos_negs))
    assert jnp.allclose(loss, ref, rtol=2e-3, atol=2e-3), (loss, ref)

    print("KERNEL_OK")
</pallas_src>

<mosaic_0001>
module attributes {stable_mosaic.version = 11 : i64} {
  func.func @_mnrl_kernel(%arg0: i32, %arg1: memref<8x128xf32, #tpu.memory_space<vmem>>, %arg2: memref<16x128xf32, #tpu.memory_space<vmem>>, %arg3: memref<1x8x128xf32, #tpu.memory_space<vmem>>) attributes {dimension_semantics = [#tpu.dimension_semantics<parallel>], iteration_bounds = array<i64: 2>, scalar_prefetch = 0 : i64, scratch_operands = 0 : i64, tpu.core_type = #tpu.core_type<tc>, window_params = [{transform_indices = @transform_0, window_bounds = array<i64: 8, 128>}, {pipeline_mode = #tpu.pipeline_mode<synchronous>, transform_indices = @transform_1, window_bounds = array<i64: 16, 128>}, {transform_indices = @transform_2, window_bounds = array<i64: 1, 8, 128>}]} {
    %c0 = arith.constant 0 : index
    %c0_0 = arith.constant 0 : index
    %0 = vector.load %arg1[%c0, %c0_0] : memref<8x128xf32, #tpu.memory_space<vmem>>, vector<8x128xf32>
    %1 = arith.mulf %0, %0 : vector<8x128xf32>
    %cst = arith.constant dense<0.000000e+00> : vector<8xf32>
    %2 = vector.multi_reduction <add>, %1, %cst [1] : vector<8x128xf32> to vector<8xf32>
    %3 = vector.shape_cast %2 : vector<8xf32> to vector<8x1xf32>
    %cst_1 = arith.constant 1.000000e-16 : f32
    %4 = vector.broadcast %cst_1 : f32 to vector<8x1xf32>
    %5 = arith.maximumf %3, %4 : vector<8x1xf32>
    %6 = math.rsqrt %5 : vector<8x1xf32>
    %cst_2 = arith.constant 2.000000e+01 : f32
    %7 = vector.broadcast %cst_2 : f32 to vector<8x1xf32>
    %8 = arith.mulf %6, %7 : vector<8x1xf32>
    %9 = vector.broadcast %8 : vector<8x1xf32> to vector<8x128xf32>
    %10 = arith.mulf %0, %9 : vector<8x128xf32>
    %c0_3 = arith.constant 0 : index
    %c0_4 = arith.constant 0 : index
    %11 = vector.load %arg2[%c0_3, %c0_4] : memref<16x128xf32, #tpu.memory_space<vmem>>, vector<16x128xf32>
    %cst_5 = arith.constant dense<0.000000e+00> : vector<8x16xf32>
    %12 = tpu.matmul %10, %11, %cst_5 {dimension_numbers = #tpu.dot_dimension_numbers<[1], [1], [0], [0], [0, 0, 1, 0], [], []>} : vector<8x128xf32>, vector<16x128xf32>, vector<8x16xf32> -> vector<8x16xf32>
    %cst_6 = arith.constant 2.000000e+01 : f32
    %13 = vector.broadcast %cst_6 : f32 to vector<8x16xf32>
    %14 = arith.subf %12, %13 : vector<8x16xf32>
    %15 = math.exp %14 : vector<8x16xf32>
    %cst_7 = arith.constant dense<0.000000e+00> : vector<8xf32>
    %16 = vector.multi_reduction <add>, %15, %cst_7 [1] : vector<8x16xf32> to vector<8xf32>
    %17 = vector.shape_cast %16 : vector<8xf32> to vector<8x1xf32>
    %18 = math.log %17 : vector<8x1xf32>
    %cst_8 = arith.constant 2.000000e+01 : f32
    %19 = vector.broadcast %cst_8 : f32 to vector<8x1xf32>
    %20 = arith.addf %19, %18 : vector<8x1xf32>
    %c8_i32 = arith.constant 8 : i32
    %21 = arith.muli %arg0, %c8_i32 : i32
    %22 = tpu.assume_multiple %21, 8 : i32
    %23 = arith.index_cast %22 : i32 to index
    %c0_9 = arith.constant 0 : index
    %24 = vector.load %arg2[%23, %c0_9] : memref<16x128xf32, #tpu.memory_space<vmem>>, vector<8x128xf32>
    %25 = arith.mulf %10, %24 : vector<8x128xf32>
    %cst_10 = arith.constant dense<0.000000e+00> : vector<8xf32>
    %26 = vector.multi_reduction <add>, %25, %cst_10 [1] : vector<8x128xf32> to vector<8xf32>
    %27 = vector.shape_cast %26 : vector<8xf32> to vector<8x1xf32>
    %28 = arith.subf %20, %27 : vector<8x1xf32>
    %29 = vector.shape_cast %28 : vector<8x1xf32> to vector<1x8x1xf32>
    %cst_11 = arith.constant dense<0.000000e+00> : vector<1xf32>
    %30 = vector.multi_reduction <add>, %29, %cst_11 [1, 2] : vector<1x8x1xf32> to vector<1xf32>
    %31 = vector.shape_cast %30 : vector<1xf32> to vector<1x1x1xf32>
    %32 = vector.extract %31[0, 0, 0] : f32 from vector<1x1x1xf32>
    %33 = vector.broadcast %32 : f32 to vector<1x8x128xf32>
    %c0_12 = arith.constant 0 : index
    %c0_13 = arith.constant 0 : index
    %c0_14 = arith.constant 0 : index
    %34 = vector.load %arg3[%c0_12, %c0_13, %c0_14] : memref<1x8x128xf32, #tpu.memory_space<vmem>>, vector<1x8x128xf32>
    tpu.vector_store %arg3[%c0_12, %c0_13, %c0_14], %33 {strides = array<i32>} : memref<1x8x128xf32, #tpu.memory_space<vmem>>, vector<1x8x128xf32>,
    return
  }
  func.func @transform_0(%arg0: i32) -> (i32, i32) {
    %c0_i32 = arith.constant 0 : i32
    %c0_i32_0 = arith.constant 0 : i32
    return %arg0, %c0_i32 : i32, i32
  }
  func.func @transform_1(%arg0: i32) -> (i32, i32) {
    %c0_i32 = arith.constant 0 : i32
    %c0_i32_0 = arith.constant 0 : i32
    %c0_i32_1 = arith.constant 0 : i32
    return %c0_i32, %c0_i32_0 : i32, i32
  }
  func.func @transform_2(%arg0: i32) -> (i32, i32, i32) {
    %c0_i32 = arith.constant 0 : i32
    %c0_i32_0 = arith.constant 0 : i32
    %c0_i32_1 = arith.constant 0 : i32
    return %arg0, %c0_i32, %c0_i32_0 : i32, i32, i32
  }
}

</mosaic_0001>

<bundles_post_ra>
// kernel: tpu_custom_call.1
= control target key start
LH: loop header
LB: loop body
LE: loop exit
PB: predicated region body
PF: predicated region fallthrough
CT: control target
= control target key end

     0   :  { %7 = vsyncpa [#allocation3], 0  ;;  %s722_s0 = inlined_call_operand.hbm [shape: f32[16,128], index: 0, kind: input, shape index: {}]   ;;  %s723_s1 = inlined_call_operand.hbm [shape: f32[16,128], index: 1, kind: input, shape index: {}]   ;;  %s724_s2 = inlined_call_operand.hbm [shape: f32[2,8,128], index: 2, kind: output, shape index: {}]  }
   0x1   :  { %9 = vsyncpa [#allocation3 + $0x1], 0 }
   0x2   :  { %10 = vsyncpa [#allocation6], 0 }
   0x3   :  { %11 = vsyncpa [#allocation4], 0 }
   0x4   :  { %13 = vsyncpa [#allocation4 + $0x1], 0  ;;  %s578_s9 = smov 0   ;;  %s580_s10 = smov 0  }
   0x5   :  { %s582_s11 = smov 0   ;;  %s584_s12 = smov 0  }
   0x6 LB: > { %s108_s15 = sshll.u32 %s723_s1, 4  ;;  %s602_s16 = sadd.s32 4294967295, %s558_s12   ;;  %s558_s12 = sphi %s584_s12, %s734_s12   ;;  %s554_s11 = sphi %s582_s11, %s733_s11   ;;  %s550_s10 = sphi %s580_s10, %s732_s10   ;;  %s546_s9 = sphi %s578_s9, %s731_s9   ;;  %s109_s15 = int_to_ptr.hbm [resolvable:$true] %s108_s15 }
   0x7   : > { %p346_p0 = scmp.ge.s32.totalorder %s558_s12, 1  ;;  %p40_p1 = scmp.eq.s32.totalorder %s602_s16, 0 }
   0x8   : > { %p97_p2 = scmp.lt.s32.totalorder %s558_s12, 3  ;;  %s560_s18 = smov [#allocation5]  }
   0x9   : > { %s110_s19 = sshll.u32 %s560_s18, 4  ;;  %s561_s20 = smov 128   ;;  %s111_s19 = int_to_ptr.vmem [resolvable:$true] %s110_s19 }
   0xa   : > { %p607_p3 = pnand %p346_p0, %p97_p2  ;;  %s562_s21 = smov 8  }
   0xb   : > { %s345_s22 = sadd.s32 4294967294, %s558_s12   ;;  %s618_s23 = sadd.s32 1, %s558_s12  }
   0xc   : > { %p371_p4 = pneg %p607_p3  ;;  %s26_s24 = sadd.s32 1, %s554_s11 }
   0xd   : > { %s23_s25 = ssub.s32 %s558_s12, %s618_s23  ;;  %p33_p7 = scmp.ne.s32.totalorder %s554_s11, %s550_s10 }
   0xe   : > { %p372_p6 = pnand %p371_p4, %p40_p1  ;;  %p24_p8 = scmp.eq.s32.totalorder %s23_s25, 0 }
   0xf   : > { %p34_p9 = scmp.eq.s32.totalorder %s558_s12, 0  ;;  %p39_p10 = scmp.ne.s32.totalorder %s550_s10, %s546_s9 }
  0x10   : > { %374 = dma.hbm_to_vmem [thread:$0]  (!%p372_p6), %s109_s15, 256, %s111_s19, [#allocation6], %s561_s20, %s561_s20, %s562_s21  }
  0x11   : > { %p84_p11 = scmp.eq.s32.totalorder %s602_s16, 1  ;;  %p634_p12 = por %p40_p1, %p39_p10 }
  0x12   : > { %s630_s26 = scalar_select %p24_p8, %s554_s11, %s26_s24  }
  0x13   : > { %p638_p13 = por %p84_p11, %p33_p7  ;;  %p90_p0 = scmp.eq.s32.totalorder %s345_s22, 1 }
  0x14   : > { %p35_p2 = por %p34_p9, %p33_p7  ;;  %s124_s29 = sand.u32 1, %s554_s11  }
  0x15   : > { %p643_p4 = por %p90_p0, %p39_p10  ;;  %p384_p6 = scmp.lt.s32.totalorder %s558_s12, 2 }
  0x16   : > { %s349_s3 = sshll.u32 %s124_s29, 3  ;;  %s350_s4 = sshll.u32 %s558_s12, 3 }
  0x17   : > { %s132_s7 = scalar_lea.hbm %s722_s0, %s350_s4  ;;  %s128_s13 = scalar_lea.vmem [#allocation2], %s349_s3 }
  0x18   : > { %s134_s8 = sshll.u32 %s132_s7, 4  ;;  %s136_s14 = sshll.u32 %s128_s13, 4  ;;  %s135_s8 = int_to_ptr.hbm [resolvable:$true] %s134_s8  ;;  %s137_s14 = int_to_ptr.vmem [resolvable:$true] %s136_s14 }
  0x19   : > { %p652_p8 = pnand %p384_p6, %p35_p2  ;;  %s125_s18 = scalar_lea.sflag [#allocation3], %s124_s29 }
  0x1a   : > { %s458_s19 = sshra.s32 %s135_s8, 4  ;;  %s465_s24 = scalar_lea.hbm %s722_s0, 16  ;;  %s459_s19 = int_to_ptr.hbm [resolvable:$true] %s458_s19 }
  0x1b   : > { %s460_s20 = scalar_lea.hbm %s459_s19, 8  ;;  %p462_p9 = pneg %p652_p8 }
  0x1c   : > { %p461_p7 = scmp.ne.s32.totalorder %s459_s19, %s460_s20  ;;  %p466_p0 = scmp.lt.s32.totalorder %s459_s19, %s722_s0 }
  0x1d   : > { %p467_p2 = scmp.lt.s32.totalorder %s465_s24, %s460_s20 }
  0x1e   : > { %p463_p10 = pnand %p462_p9, %p461_p7 }
  0x1f   : > { %p468_p6 = por %p467_p2, %p466_p0 }
  0x20   : > { %p464_p11 = pneg %p463_p10 }
  0x22   : > { %p469_p5 = pnand %p468_p6, %p464_p11 }
  0x24   : > { %472 = shalt.err (!%p469_p5)
}
  0x25   : > { %378 = dma.hbm_to_vmem [thread:$0]  (!%p652_p8), %s135_s8, 128, %s137_s14, %s125_s18  }
  0x26   : > { %145 = sbr.rel (%p607_p3) target bundleno = 639 (0x27f), region = 28  ;;  %s669_s29 = sand.u32 (!%p607_p3), 1, %s550_s10  }
  0x27   : > { %s352_s4 = sshll.u32 (!%p607_p3), %s669_s29, 3  ;;  %s148_s5 = scalar_lea.sflag (!%p607_p3), [#allocation3], %s669_s29 }
  0x28   : > { %s151_s6 = scalar_lea.vmem (!%p607_p3), [#allocation2], %s352_s4 }
  0x2b   : > { %533 = dma.done.wait (%p634_p12), %s148_s5, 128  }
  0x2c   : > { %535 = vsyncadd (%p634_p12), %s148_s5, 4294967168 }
  0x2d   : > { %537 = dma.done.wait (%p40_p1), [#allocation6], 256  }
  0x2e   : > { %539 = vsyncadd (%p40_p1), [#allocation6], 4294967040  ;;  %v178_v0 = vld [vmem:[%s151_s6] sm:$0xff]  ;;  %v196_v2 = vld [vmem:[#allocation5 + $0x8] sm:$0xff]  ;;  %s356_s17 = sshll.u32 %s602_s16, 3  ;;  %vm220_vm3 = vcmask 130048  }
  0x2f   : > { %v179_v1 = vmul.f32 %v178_v0, %v178_v0  ;;  %211 = vmatpush.xpose.msra.mxu0 %v196_v2  ;;  %v195_v3 = vld [vmem:[#allocation5] sm:$0xff]  ;;  %s228_s27 = scalar_lea.vmem [#allocation5], %s356_s17  ;;  %vm234_vm4 = vcmask 7168   ;;  %s258_s13 = scalar_lea.hbm %s724_s2, %s356_s17 }
  0x30   : > { %v229_v14 = vld [vmem:[%s228_s27] sm:$0xff]  ;;  %s262_s14 = sshll.u32 %s258_s13, 4  ;;  %s177_s15 = scalar_lea.vmem [#allocation7], %s352_s4  ;;  %s263_s14 = int_to_ptr.hbm [resolvable:$true] %s262_s14 }
  0x31   : > { %180 = vadd.xlane.f32.xlu0 %v179_v1  ;;  %s260_s18 = sshll.u32 %s177_s15, 4  ;;  %s248_s20 = scalar_lea.sflag [#allocation4], %s669_s29  ;;  %s261_s18 = int_to_ptr.vmem [resolvable:$true] %s260_s18 }
  0x32   : > { %s502_s21 = sshra.s32 %s263_s14, 4  ;;  %s508_s25 = scalar_lea.hbm %s724_s2, 16  ;;  %s503_s21 = int_to_ptr.hbm [resolvable:$true] %s502_s21 }
  0x33   : > { %212 = vmatpush.xpose.msra.mxu0 %v195_v3  ;;  %s504_s22 = scalar_lea.hbm %s503_s21, 8  ;;  %p509_p12 = scmp.lt.s32.totalorder %s503_s21, %s724_s2 }
  0x34   : > { %p505_p1 = scmp.ne.s32.totalorder %s503_s21, %s504_s22  ;;  %p510_p8 = scmp.lt.s32.totalorder %s508_s25, %s504_s22 }
  0x36   : > { %p506_p3 = pnand %p505_p1, %p638_p13  ;;  %p511_p7 = por %p510_p8, %p509_p12 }
  0x38   : > { %p507_p5 = pneg %p506_p3 }
  0x3a   : > { %p512_p9 = pnand %p511_p7, %p507_p5 }
  0xa4   : > { %v181_v4 = vpop.xlane.xlu0 %180 }
  0xa5   : > { %v182_v5 = vmax.f32 %v181_v4, 1e-16 }
  0xa7   : > { %422 = vrsqrt.f32 %v182_v5  ;;  %vm189_vm1 = vweird.f32 %v182_v5 }
  0xad   : > { %v423_v6 = vpop.eup %422 }
  0xae   : > { %v184_v7 = vmul.f32 %v423_v6, %v182_v5  ;;  %vm190_vm0 = vweird.f32 %v423_v6 }
  0xaf   : > { %vm191_vm2 = vmor %vm189_vm1, %vm190_vm0 }
  0xb0   : > { %v185_v8 = vmul.f32 %v423_v6, %v184_v7 }
  0xb2   : > { %v186_v9 = vmul.f32 0.5, %v185_v8 }
  0xb4   : > { %v187_v10 = vsub.f32 1.5, %v186_v9 }
  0xb6   : > { %v188_v11 = vmul.f32 %v423_v6, %v187_v10 }
  0xb8   : > { %v192_v12 = vsel %vm191_vm2, %v423_v6, %v188_v11 }
  0xb9   : > { %v193_v13 = vmul.f32 20.0, %v192_v12 }
  0xbb   : > { %v194_v15 = vmul.f32 %v193_v13, %v178_v0 }
  0xbd   : > { %213 = vmatmul.f32.vlgmr.msra.gmra.mxu0 %v194_v15  ;;  %v230_v16 = vmul.f32 %v229_v14, %v194_v15 }
  0xbf   : > { %231 = vadd.xlane.f32.xlu1 %v230_v16 }
 0x132   : > { %v232_v26 = vpop.xlane.xlu1 %231 }
 0x13a   : > { %v214_v17 = vpop.f32.mrf.mxu0 }
 0x13b   : > { %v355_v18 = vadd.f32 -20.0, %v214_v17 }
 0x13d   : > { %v218_v19 = vmul.f32 1.442695, %v355_v18 }
 0x13f   : > { %424 = vpow2.f32 %v218_v19 }
 0x145   : > { %v425_v20 = vpop.eup %424 }
 0x146   : > { %v221_v21 = vsel %vm220_vm3, %v425_v20, 0.0 }
 0x147   : > { %222 = vadd.xlane.f32.xlu0 %v221_v21 }
 0x1ba   : > { %v223_v22 = vpop.xlane.xlu0 %222 }
 0x1bb   : > { %426 = vlog2.f32 %v223_v22 }
 0x1c1   : > { %v427_v23 = vpop.eup %426 }
 0x1c2   : > { %v225_v24 = vmul.f32 0.6931472, %v427_v23 }
 0x1c4   : > { %v226_v25 = vadd.f32 20.0, %v225_v24 }
 0x1c6   : > { %v233_v27 = vsub.f32 %v226_v25, %v232_v26 }
 0x1c8   : > { %v235_v28 = vsel %vm234_vm4, %v233_v27, 0.0 }
 0x1c9   : > { %236 = vadd.xlane.f32.xlu1 %v235_v28 }
 0x23c   : > { %v237_v29 = vpop.xlane.xlu1 %236 }
 0x23d   : > { %v238_v30 = vrot.slane %v237_v29, 4 }
 0x23f   : > { %v239_v31 = vadd.f32 %v238_v30, %v237_v29 }
 0x241   : > { %v240_v32 = vrot.slane %v239_v31, 2 }
 0x243   : > { %v241_v33 = vadd.f32 %v240_v32, %v239_v31 }
 0x245   : > { %v242_v34 = vrot.slane %v241_v33, 1 }
 0x247   : > { %v243_v35 = vadd.f32 %v242_v34, %v241_v33 }
 0x249   : > { %361 = vpush %v243_v35 }
 0x27a   : > { %s362_s19 = spop %361 }
 0x27b   : > { %v245_v36 = vstv %s362_s19 }
 0x27c   : > { %246 = vst [vmem:[%s177_s15] sm:$0xff] %v245_v36 }
 0x27d   : > { %515 = shalt.err (!%p512_p9)
}
 0x27e   : > { %369 = dma.vmem_to_hbm [thread:$0]  (%p638_p13), %s261_s18, 128, %s263_s14, %s248_s20  }
 0x27f PF: > { %s274_s29 = sand.u32 1, %s546_s9   ;;  %p730_p10 = scmp.ge.s32.totalorder %s558_s12, 2 }
 0x280   : > { %s275_s5 = scalar_lea.sflag [#allocation4], %s274_s29 }
 0x281   : > { %p380_p11 = pnand %p730_p10, %p643_p4 }
 0x283   : > { %p381_p0 = pneg %p380_p11 }
 0x285   : > { %541 = dma.done.wait (%p381_p0), %s275_s5, 128  }
 0x286   : > { %543 = vsyncadd (%p381_p0), %s275_s5, 4294967168  ;;  %p16_p2 = scmp.ge.s32.totalorder %s618_s23, 4   ;;  %s731_s9 = smov %s550_s10 }
 0x287   : > { %s732_s10 = smov %s554_s11  ;;  %s733_s11 = smov %s630_s26 }
 0x288   : > { %s734_s12 = smov %s618_s23  ;;  %18 = sbr.rel (!%p16_p2) target bundleno = 6 (0x6), region = 78 }
 0x28d   :  { %281 = vsyncpa [#allocation3], 1 }
 0x28e   :  { %283 = vsyncpa [#allocation3 + $0x1], 1 }
 0x28f   :  { %284 = vsyncpa [#allocation6], 1 }
 0x290   :  { %285 = vsyncpa [#allocation4], 1 }
 0x291   :  { %287 = vsyncpa [#allocation4 + $0x1], 1 }

</bundles_post_ra>
